<compile_context>
chip_gen: v6e
topology: v6e:2x2x1
jax: 0.10.0
libtpu: 0.0.40
codegen_flags: <defaults>
</compile_context>

<pallas_src>
import functools
import math

import jax
import jax.numpy as jnp
from jax.experimental import pallas as pl
from jax.experimental.pallas import tpu as pltpu


def msa_kernel(xq_ref, xkv_ref, gamma_ref, beta_ref,
               wq_ref, bq_ref, wkv_ref, bkv_ref, wo_ref, bo_ref,
               o_ref, *, num_heads, eps=1e-5):
    H = num_heads
    gamma = gamma_ref[...].astype(jnp.float32)       # (1, E)
    beta = beta_ref[...].astype(jnp.float32)         # (1, E)

    def layernorm(x):                                # f32 in / f32 out
        mean = jnp.mean(x, axis=-1, keepdims=True)
        var = jnp.mean(jnp.square(x - mean), axis=-1, keepdims=True)
        return (x - mean) * jax.lax.rsqrt(var + eps) * gamma + beta

    xq = xq_ref[0].astype(jnp.float32)               # (Tq, E) query tile
    xkv = xkv_ref[0].astype(jnp.float32)             # (S , E) full sequence
    Tq, E = xq.shape
    S = xkv.shape[0]
    Dh = E // H

    # LayerNorm statistics in f32; matmul operands in bf16 (f32 accumulation).
    xq_n = layernorm(xq).astype(jnp.bfloat16)
    xkv_n = layernorm(xkv).astype(jnp.bfloat16)

    # Projections: weights arrive pre-transposed and the 1/sqrt(Dh) scale is
    # already folded into wq/bq -> no `.T` and no extra scale multiply here.
    q = jnp.dot(xq_n, wq_ref[...], preferred_element_type=jnp.float32) + bq_ref[...]
    kv = jnp.dot(xkv_n, wkv_ref[...], preferred_element_type=jnp.float32) + bkv_ref[...]

    # Head-batched layout (H, rows, Dh): one batched contraction feeds the MXU
    # for all heads at once (no per-head loop, no concatenate).
    qh = jnp.transpose(q.reshape(Tq, H, Dh), (1, 0, 2)).astype(jnp.bfloat16)
    kh = jnp.transpose(kv[:, :E].reshape(S, H, Dh), (1, 0, 2)).astype(jnp.bfloat16)
    vh = jnp.transpose(kv[:, E:].reshape(S, H, Dh), (1, 0, 2)).astype(jnp.bfloat16)

    s = jnp.einsum('hqd,hkd->hqk', qh, kh,
                   preferred_element_type=jnp.float32)        # (H, Tq, S) f32
    m = jnp.max(s, axis=-1, keepdims=True)
    p = jnp.exp(s - m)
    denom = jnp.sum(p, axis=-1, keepdims=True)
    p = p * pl.reciprocal(denom, approx=True)                 # EUP divide

    attn = jnp.einsum('hqk,hkd->hqd', p.astype(jnp.bfloat16), vh,
                      preferred_element_type=jnp.float32)     # (H, Tq, Dh)
    attn = jnp.transpose(attn, (1, 0, 2)).reshape(Tq, E).astype(jnp.bfloat16)

    out = jnp.dot(attn, wo_ref[...], preferred_element_type=jnp.float32) + bo_ref[...]
    o_ref[0] = out.astype(o_ref.dtype)


def _pick_query_tile(S):
    for cand in (256, 128):
        if S % cand == 0:
            return cand
    return S  # small / indivisible sequence: single query tile


def msa_block(x, gamma, beta, wqkv, bqkv, wo, bo, *, num_heads):
    """x: (B, S, E). Params in PyTorch layout: gamma/beta (E,), wqkv (3E,E),
    bqkv (3E,), wo (E,E), bo (E,)."""
    B, S, E = x.shape
    assert E % num_heads == 0
    Dh = E // num_heads
    scale = 1.0 / math.sqrt(Dh)

    # Wrapper-side prep (free at trace time): pre-transpose weights, fold the
    # q-scale, cast matmul operands to bf16, keep biases / LN params in f32.
    wq_t = (scale * wqkv[:E, :]).T.astype(jnp.bfloat16)        # (E, E)
    bq = (scale * bqkv[:E]).reshape(1, E).astype(jnp.float32)
    wkv_t = wqkv[E:, :].T.astype(jnp.bfloat16)                 # (E, 2E): [K | V]
    bkv = bqkv[E:].reshape(1, 2 * E).astype(jnp.float32)
    wo_t = wo.T.astype(jnp.bfloat16)                           # (E, E)
    bo2 = bo.reshape(1, E).astype(jnp.float32)
    gamma2 = gamma.reshape(1, E).astype(jnp.float32)
    beta2 = beta.reshape(1, E).astype(jnp.float32)

    tq = _pick_query_tile(S)
    n_qt = S // tq

    kernel = functools.partial(msa_kernel, num_heads=num_heads)
    return pl.pallas_call(
        kernel,
        out_shape=jax.ShapeDtypeStruct((B, S, E), x.dtype),
        grid=(B, n_qt),
        in_specs=[
            pl.BlockSpec((1, tq, E), lambda b, qt: (b, qt, 0)),   # x: query tile
            pl.BlockSpec((1, S, E), lambda b, qt: (b, 0, 0)),     # x: full seq (K/V)
            pl.BlockSpec((1, E), lambda b, qt: (0, 0)),           # ln gamma
            pl.BlockSpec((1, E), lambda b, qt: (0, 0)),           # ln beta
            pl.BlockSpec((E, E), lambda b, qt: (0, 0)),           # wq^T (scaled)
            pl.BlockSpec((1, E), lambda b, qt: (0, 0)),           # bq (scaled)
            pl.BlockSpec((E, 2 * E), lambda b, qt: (0, 0)),       # wkv^T
            pl.BlockSpec((1, 2 * E), lambda b, qt: (0, 0)),       # bkv
            pl.BlockSpec((E, E), lambda b, qt: (0, 0)),           # wo^T
            pl.BlockSpec((1, E), lambda b, qt: (0, 0)),           # bo
        ],
        out_specs=pl.BlockSpec((1, tq, E), lambda b, qt: (b, qt, 0)),
        compiler_params=pltpu.CompilerParams(
            dimension_semantics=("parallel", "parallel"),
            vmem_limit_bytes=48 * 1024 * 1024,
        ),
    )(x, x, gamma2, beta2, wq_t, bq, wkv_t, bkv, wo_t, bo2)


def msa_reference(x, gamma, beta, wqkv, bqkv, wo, bo, *, num_heads, eps=1e-5):
    """Pure-JAX f32 reference reproducing PyTorch semantics."""
    B, S, E = x.shape
    Dh = E // num_heads
    mean = jnp.mean(x, axis=-1, keepdims=True)
    var = jnp.mean((x - mean) ** 2, axis=-1, keepdims=True)
    xn = (x - mean) / jnp.sqrt(var + eps) * gamma + beta
    qkv = xn @ wqkv.T + bqkv
    q, k, v = qkv[..., :E], qkv[..., E:2 * E], qkv[..., 2 * E:]

    def split(t):  # (B, S, E) -> (B, H, S, Dh)
        return t.reshape(B, S, num_heads, Dh).transpose(0, 2, 1, 3)

    qh, kh, vh = split(q), split(k), split(v)
    s = jnp.einsum('bhqd,bhkd->bhqk', qh, kh) / math.sqrt(Dh)
    p = jax.nn.softmax(s, axis=-1)
    o = jnp.einsum('bhqk,bhkd->bhqd', p, vh)
    o = o.transpose(0, 2, 1, 3).reshape(B, S, E)
    return o @ wo.T + bo


if __name__ == "__main__":
    B, S, E, H = 2, 8, 32, 4
    key = jax.random.PRNGKey(0)
    kx, kg, kb, kw, kwb, ko, kob = jax.random.split(key, 7)

    x = jax.random.normal(kx, (B, S, E), dtype=jnp.float32)
    # LayerNorm params (PyTorch-like init plus tiny noise so they matter).
    gamma = (jnp.ones((E,)) + 0.01 * jax.random.normal(kg, (E,))).astype(jnp.float32)
    beta = (0.01 * jax.random.normal(kb, (E,))).astype(jnp.float32)
    # MultiheadAttention params: in_proj (3E, E), in_proj_bias (3E,),
    # out_proj.weight (E, E), out_proj.bias (E,).
    wqkv = (jax.random.normal(kw, (3 * E, E)) / math.sqrt(E)).astype(jnp.float32)
    bqkv = (0.01 * jax.random.normal(kwb, (3 * E,))).astype(jnp.float32)
    wo = (jax.random.normal(ko, (E, E)) / math.sqrt(E)).astype(jnp.float32)
    bo = (0.01 * jax.random.normal(kob, (E,))).astype(jnp.float32)

    out = msa_block(x, gamma, beta, wqkv, bqkv, wo, bo, num_heads=H)
    out = jax.block_until_ready(out)

    ref = msa_reference(x, gamma, beta, wqkv, bqkv, wo, bo, num_heads=H)
    assert out.shape == (B, S, E)
    # bf16 matmul operands + approx reciprocal vs. an f32 reference.
    assert jnp.allclose(out, ref, rtol=5e-2, atol=5e-2), (
        "mismatch vs reference: max abs diff = %f" % float(jnp.max(jnp.abs(out - ref))))

    print("KERNEL_OK")
</pallas_src>

<mosaic_0001>
module attributes {stable_mosaic.version = 11 : i64} {
  func.func @msa_kernel(%arg0: i32, %arg1: i32, %arg2: memref<1x8x32xf32, #tpu.memory_space<vmem>>, %arg3: memref<1x8x32xf32, #tpu.memory_space<vmem>>, %arg4: memref<1x32xf32, #tpu.memory_space<vmem>>, %arg5: memref<1x32xf32, #tpu.memory_space<vmem>>, %arg6: memref<32x32xbf16, #tpu.memory_space<vmem>>, %arg7: memref<1x32xf32, #tpu.memory_space<vmem>>, %arg8: memref<32x64xbf16, #tpu.memory_space<vmem>>, %arg9: memref<1x64xf32, #tpu.memory_space<vmem>>, %arg10: memref<32x32xbf16, #tpu.memory_space<vmem>>, %arg11: memref<1x32xf32, #tpu.memory_space<vmem>>, %arg12: memref<1x8x32xf32, #tpu.memory_space<vmem>>) attributes {dimension_semantics = [#tpu.dimension_semantics<parallel>, #tpu.dimension_semantics<parallel>], iteration_bounds = array<i64: 2, 1>, scalar_prefetch = 0 : i64, scratch_operands = 0 : i64, tpu.core_type = #tpu.core_type<tc>, window_params = [{transform_indices = @transform_0, window_bounds = array<i64: 1, 8, 32>}, {transform_indices = @transform_1, window_bounds = array<i64: 1, 8, 32>}, {pipeline_mode = #tpu.pipeline_mode<synchronous>, transform_indices = @transform_2, window_bounds = array<i64: 1, 32>}, {pipeline_mode = #tpu.pipeline_mode<synchronous>, transform_indices = @transform_3, window_bounds = array<i64: 1, 32>}, {pipeline_mode = #tpu.pipeline_mode<synchronous>, transform_indices = @transform_4, window_bounds = array<i64: 32, 32>}, {pipeline_mode = #tpu.pipeline_mode<synchronous>, transform_indices = @transform_5, window_bounds = array<i64: 1, 32>}, {pipeline_mode = #tpu.pipeline_mode<synchronous>, transform_indices = @transform_6, window_bounds = array<i64: 32, 64>}, {pipeline_mode = #tpu.pipeline_mode<synchronous>, transform_indices = @transform_7, window_bounds = array<i64: 1, 64>}, {pipeline_mode = #tpu.pipeline_mode<synchronous>, transform_indices = @transform_8, window_bounds = array<i64: 32, 32>}, {pipeline_mode = #tpu.pipeline_mode<synchronous>, transform_indices = @transform_9, window_bounds = array<i64: 1, 32>}, {transform_indices = @transform_10, window_bounds = array<i64: 1, 8, 32>}]} {
    %c0 = arith.constant 0 : index
    %c0_0 = arith.constant 0 : index
    %0 = vector.load %arg4[%c0, %c0_0] : memref<1x32xf32, #tpu.memory_space<vmem>>, vector<1x32xf32>
    %c0_1 = arith.constant 0 : index
    %c0_2 = arith.constant 0 : index
    %1 = vector.load %arg5[%c0_1, %c0_2] : memref<1x32xf32, #tpu.memory_space<vmem>>, vector<1x32xf32>
    %c0_3 = arith.constant 0 : index
    %c0_4 = arith.constant 0 : index
    %c0_5 = arith.constant 0 : index
    %2 = vector.load %arg2[%c0_3, %c0_4, %c0_5] : memref<1x8x32xf32, #tpu.memory_space<vmem>>, vector<1x8x32xf32>
    %3 = vector.shape_cast %2 : vector<1x8x32xf32> to vector<8x32xf32>
    %c0_6 = arith.constant 0 : index
    %c0_7 = arith.constant 0 : index
    %c0_8 = arith.constant 0 : index
    %4 = vector.load %arg3[%c0_6, %c0_7, %c0_8] : memref<1x8x32xf32, #tpu.memory_space<vmem>>, vector<1x8x32xf32>
    %5 = vector.shape_cast %4 : vector<1x8x32xf32> to vector<8x32xf32>
    %cst = arith.constant dense<0.000000e+00> : vector<8xf32>
    %6 = vector.multi_reduction <add>, %3, %cst [1] : vector<8x32xf32> to vector<8xf32>
    %7 = vector.shape_cast %6 : vector<8xf32> to vector<8x1xf32>
    %cst_9 = arith.constant 3.200000e+01 : f32
    %8 = vector.broadcast %cst_9 : f32 to vector<8x1xf32>
    %9 = arith.divf %7, %8 : vector<8x1xf32>
    %10 = vector.broadcast %9 : vector<8x1xf32> to vector<8x32xf32>
    %11 = arith.subf %3, %10 : vector<8x32xf32>
    %12 = arith.mulf %11, %11 : vector<8x32xf32>
    %cst_10 = arith.constant dense<0.000000e+00> : vector<8xf32>
    %13 = vector.multi_reduction <add>, %12, %cst_10 [1] : vector<8x32xf32> to vector<8xf32>
    %14 = vector.shape_cast %13 : vector<8xf32> to vector<8x1xf32>
    %cst_11 = arith.constant 3.200000e+01 : f32
    %15 = vector.broadcast %cst_11 : f32 to vector<8x1xf32>
    %16 = arith.divf %14, %15 : vector<8x1xf32>
    %17 = vector.broadcast %9 : vector<8x1xf32> to vector<8x32xf32>
    %18 = arith.subf %3, %17 : vector<8x32xf32>
    %cst_12 = arith.constant 9.99999974E-6 : f32
    %19 = vector.broadcast %cst_12 : f32 to vector<8x1xf32>
    %20 = arith.addf %16, %19 : vector<8x1xf32>
    %21 = math.rsqrt %20 : vector<8x1xf32>
    %22 = vector.broadcast %21 : vector<8x1xf32> to vector<8x32xf32>
    %23 = arith.mulf %18, %22 : vector<8x32xf32>
    %24 = vector.broadcast %0 : vector<1x32xf32> to vector<8x32xf32>
    %25 = arith.mulf %23, %24 : vector<8x32xf32>
    %26 = vector.broadcast %1 : vector<1x32xf32> to vector<8x32xf32>
    %27 = arith.addf %25, %26 : vector<8x32xf32>
    %28 = arith.truncf %27 : vector<8x32xf32> to vector<8x32xbf16>
    %cst_13 = arith.constant dense<0.000000e+00> : vector<8xf32>
    %29 = vector.multi_reduction <add>, %5, %cst_13 [1] : vector<8x32xf32> to vector<8xf32>
    %30 = vector.shape_cast %29 : vector<8xf32> to vector<8x1xf32>
    %cst_14 = arith.constant 3.200000e+01 : f32
    %31 = vector.broadcast %cst_14 : f32 to vector<8x1xf32>
    %32 = arith.divf %30, %31 : vector<8x1xf32>
    %33 = vector.broadcast %32 : vector<8x1xf32> to vector<8x32xf32>
    %34 = arith.subf %5, %33 : vector<8x32xf32>
    %35 = arith.mulf %34, %34 : vector<8x32xf32>
    %cst_15 = arith.constant dense<0.000000e+00> : vector<8xf32>
    %36 = vector.multi_reduction <add>, %35, %cst_15 [1] : vector<8x32xf32> to vector<8xf32>
    %37 = vector.shape_cast %36 : vector<8xf32> to vector<8x1xf32>
    %cst_16 = arith.constant 3.200000e+01 : f32
    %38 = vector.broadcast %cst_16 : f32 to vector<8x1xf32>
    %39 = arith.divf %37, %38 : vector<8x1xf32>
    %40 = vector.broadcast %32 : vector<8x1xf32> to vector<8x32xf32>
    %41 = arith.subf %5, %40 : vector<8x32xf32>
    %cst_17 = arith.constant 9.99999974E-6 : f32
    %42 = vector.broadcast %cst_17 : f32 to vector<8x1xf32>
    %43 = arith.addf %39, %42 : vector<8x1xf32>
    %44 = math.rsqrt %43 : vector<8x1xf32>
    %45 = vector.broadcast %44 : vector<8x1xf32> to vector<8x32xf32>
    %46 = arith.mulf %41, %45 : vector<8x32xf32>
    %47 = vector.broadcast %0 : vector<1x32xf32> to vector<8x32xf32>
    %48 = arith.mulf %46, %47 : vector<8x32xf32>
    %49 = vector.broadcast %1 : vector<1x32xf32> to vector<8x32xf32>
    %50 = arith.addf %48, %49 : vector<8x32xf32>
    %51 = arith.truncf %50 : vector<8x32xf32> to vector<8x32xbf16>
    %c0_18 = arith.constant 0 : index
    %c0_19 = arith.constant 0 : index
    %52 = vector.load %arg6[%c0_18, %c0_19] : memref<32x32xbf16, #tpu.memory_space<vmem>>, vector<32x32xbf16>
    %cst_20 = arith.constant dense<0.000000e+00> : vector<8x32xf32>
    %53 = tpu.matmul %28, %52, %cst_20 {dimension_numbers = #tpu.dot_dimension_numbers<[1], [0], [0], [1], [0, 0, 1, 1], [], []>} : vector<8x32xbf16>, vector<32x32xbf16>, vector<8x32xf32> -> vector<8x32xf32>
    %c0_21 = arith.constant 0 : index
    %c0_22 = arith.constant 0 : index
    %54 = vector.load %arg7[%c0_21, %c0_22] : memref<1x32xf32, #tpu.memory_space<vmem>>, vector<1x32xf32>
    %55 = vector.broadcast %54 : vector<1x32xf32> to vector<8x32xf32>
    %56 = arith.addf %53, %55 : vector<8x32xf32>
    %c0_23 = arith.constant 0 : index
    %c0_24 = arith.constant 0 : index
    %57 = vector.load %arg8[%c0_23, %c0_24] : memref<32x64xbf16, #tpu.memory_space<vmem>>, vector<32x64xbf16>
    %cst_25 = arith.constant dense<0.000000e+00> : vector<8x64xf32>
    %58 = tpu.matmul %51, %57, %cst_25 {dimension_numbers = #tpu.dot_dimension_numbers<[1], [0], [0], [1], [0, 0, 1, 1], [], []>} : vector<8x32xbf16>, vector<32x64xbf16>, vector<8x64xf32> -> vector<8x64xf32>
    %c0_26 = arith.constant 0 : index
    %c0_27 = arith.constant 0 : index
    %59 = vector.load %arg9[%c0_26, %c0_27] : memref<1x64xf32, #tpu.memory_space<vmem>>, vector<1x64xf32>
    %60 = vector.broadcast %59 : vector<1x64xf32> to vector<8x64xf32>
    %61 = arith.addf %58, %60 : vector<8x64xf32>
    %62 = vector.shape_cast %56 : vector<8x32xf32> to vector<8x4x8xf32>
    %63 = tpu.transpose %62, [1, 0, 2] : vector<8x4x8xf32> -> vector<4x8x8xf32>
    %64 = arith.truncf %63 : vector<4x8x8xf32> to vector<4x8x8xbf16>
    %65 = vector.extract_strided_slice %61 {offsets = [0, 0], sizes = [8, 32], strides = [1, 1]} : vector<8x64xf32> to vector<8x32xf32>
    %66 = vector.shape_cast %65 : vector<8x32xf32> to vector<8x4x8xf32>
    %67 = tpu.transpose %66, [1, 0, 2] : vector<8x4x8xf32> -> vector<4x8x8xf32>
    %68 = arith.truncf %67 : vector<4x8x8xf32> to vector<4x8x8xbf16>
    %69 = vector.extract_strided_slice %61 {offsets = [0, 32], sizes = [8, 32], strides = [1, 1]} : vector<8x64xf32> to vector<8x32xf32>
    %70 = vector.shape_cast %69 : vector<8x32xf32> to vector<8x4x8xf32>
    %71 = tpu.transpose %70, [1, 0, 2] : vector<8x4x8xf32> -> vector<4x8x8xf32>
    %72 = arith.truncf %71 : vector<4x8x8xf32> to vector<4x8x8xbf16>
    "tpu.trace_start"() <{level = 10 : i32, message = "hqd,hkd->hqk"}> : () -> ()
    %cst_28 = arith.constant dense<0.000000e+00> : vector<4x8x8xf32>
    %73 = tpu.matmul %64, %68, %cst_28 {dimension_numbers = #tpu.dot_dimension_numbers<[2], [2], [1], [1], [0, 0, 0, 1, 1, 1], [0], [0]>} : vector<4x8x8xbf16>, vector<4x8x8xbf16>, vector<4x8x8xf32> -> vector<4x8x8xf32>
    "tpu.trace_stop"() : () -> ()
    %cst_29 = arith.constant dense<0xFF800000> : vector<4x8xf32>
    %74 = vector.multi_reduction <maximumf>, %73, %cst_29 [2] : vector<4x8x8xf32> to vector<4x8xf32>
    %75 = vector.shape_cast %74 : vector<4x8xf32> to vector<4x8x1xf32>
    %76 = vector.broadcast %75 : vector<4x8x1xf32> to vector<4x8x8xf32>
    %77 = arith.subf %73, %76 : vector<4x8x8xf32>
    %78 = math.exp %77 : vector<4x8x8xf32>
    %cst_30 = arith.constant dense<0.000000e+00> : vector<4x8xf32>
    %79 = vector.multi_reduction <add>, %78, %cst_30 [2] : vector<4x8x8xf32> to vector<4x8xf32>
    %80 = vector.shape_cast %79 : vector<4x8xf32> to vector<4x8x1xf32>
    %81 = tpu.reciprocal %80 {approx = true} : vector<4x8x1xf32> -> vector<4x8x1xf32>
    %82 = vector.broadcast %81 : vector<4x8x1xf32> to vector<4x8x8xf32>
    %83 = arith.mulf %78, %82 : vector<4x8x8xf32>
    %84 = arith.truncf %83 : vector<4x8x8xf32> to vector<4x8x8xbf16>
    "tpu.trace_start"() <{level = 10 : i32, message = "hqk,hkd->hqd"}> : () -> ()
    %cst_31 = arith.constant dense<0.000000e+00> : vector<4x8x8xf32>
    %85 = tpu.matmul %84, %72, %cst_31 {dimension_numbers = #tpu.dot_dimension_numbers<[2], [1], [1], [2], [0, 0, 0, 1, 1, 2], [0], [0]>} : vector<4x8x8xbf16>, vector<4x8x8xbf16>, vector<4x8x8xf32> -> vector<4x8x8xf32>
    "tpu.trace_stop"() : () -> ()
    %86 = tpu.transpose %85, [1, 0, 2] : vector<4x8x8xf32> -> vector<8x4x8xf32>
    %87 = vector.shape_cast %86 : vector<8x4x8xf32> to vector<8x32xf32>
    %88 = arith.truncf %87 : vector<8x32xf32> to vector<8x32xbf16>
    %c0_32 = arith.constant 0 : index
    %c0_33 = arith.constant 0 : index
    %89 = vector.load %arg10[%c0_32, %c0_33] : memref<32x32xbf16, #tpu.memory_space<vmem>>, vector<32x32xbf16>
    %cst_34 = arith.constant dense<0.000000e+00> : vector<8x32xf32>
    %90 = tpu.matmul %88, %89, %cst_34 {dimension_numbers = #tpu.dot_dimension_numbers<[1], [0], [0], [1], [0, 0, 1, 1], [], []>} : vector<8x32xbf16>, vector<32x32xbf16>, vector<8x32xf32> -> vector<8x32xf32>
    %c0_35 = arith.constant 0 : index
    %c0_36 = arith.constant 0 : index
    %91 = vector.load %arg11[%c0_35, %c0_36] : memref<1x32xf32, #tpu.memory_space<vmem>>, vector<1x32xf32>
    %92 = vector.broadcast %91 : vector<1x32xf32> to vector<8x32xf32>
    %93 = arith.addf %90, %92 : vector<8x32xf32>
    %c0_37 = arith.constant 0 : index
    %c0_38 = arith.constant 0 : index
    %c0_39 = arith.constant 0 : index
    %94 = vector.load %arg12[%c0_37, %c0_38, %c0_39] : memref<1x8x32xf32, #tpu.memory_space<vmem>>, vector<1x8x32xf32>
    %95 = vector.shape_cast %94 : vector<1x8x32xf32> to vector<8x32xf32>
    %96 = vector.shape_cast %93 : vector<8x32xf32> to vector<1x8x32xf32>
    tpu.vector_store %arg12[%c0_37, %c0_38, %c0_39], %96 {strides = array<i32>} : memref<1x8x32xf32, #tpu.memory_space<vmem>>, vector<1x8x32xf32>,
    return
  }
  func.func @transform_0(%arg0: i32, %arg1: i32) -> (i32, i32, i32) {
    %c0_i32 = arith.constant 0 : i32
    %c0_i32_0 = arith.constant 0 : i32
    return %arg0, %arg1, %c0_i32 : i32, i32, i32
  }
  func.func @transform_1(%arg0: i32, %arg1: i32) -> (i32, i32, i32) {
    %c0_i32 = arith.constant 0 : i32
    %c0_i32_0 = arith.constant 0 : i32
    %c0_i32_1 = arith.constant 0 : i32
    return %arg0, %c0_i32, %c0_i32_0 : i32, i32, i32
  }
  func.func @transform_2(%arg0: i32, %arg1: i32) -> (i32, i32) {
    %c0_i32 = arith.constant 0 : i32
    %c0_i32_0 = arith.constant 0 : i32
    %c0_i32_1 = arith.constant 0 : i32
    return %c0_i32, %c0_i32_0 : i32, i32
  }
  func.func @transform_3(%arg0: i32, %arg1: i32) -> (i32, i32) {
    %c0_i32 = arith.constant 0 : i32
    %c0_i32_0 = arith.constant 0 : i32
    %c0_i32_1 = arith.constant 0 : i32
    return %c0_i32, %c0_i32_0 : i32, i32
  }
  func.func @transform_4(%arg0: i32, %arg1: i32) -> (i32, i32) {
    %c0_i32 = arith.constant 0 : i32
    %c0_i32_0 = arith.constant 0 : i32
    %c0_i32_1 = arith.constant 0 : i32
    return %c0_i32, %c0_i32_0 : i32, i32
  }
  func.func @transform_5(%arg0: i32, %arg1: i32) -> (i32, i32) {
    %c0_i32 = arith.constant 0 : i32
    %c0_i32_0 = arith.constant 0 : i32
    %c0_i32_1 = arith.constant 0 : i32
    return %c0_i32, %c0_i32_0 : i32, i32
  }
  func.func @transform_6(%arg0: i32, %arg1: i32) -> (i32, i32) {
    %c0_i32 = arith.constant 0 : i32
    %c0_i32_0 = arith.constant 0 : i32
    %c0_i32_1 = arith.constant 0 : i32
    return %c0_i32, %c0_i32_0 : i32, i32
  }
  func.func @transform_7(%arg0: i32, %arg1: i32) -> (i32, i32) {
    %c0_i32 = arith.constant 0 : i32
    %c0_i32_0 = arith.constant 0 : i32
    %c0_i32_1 = arith.constant 0 : i32
    return %c0_i32, %c0_i32_0 : i32, i32
  }
  func.func @transform_8(%arg0: i32, %arg1: i32) -> (i32, i32) {
    %c0_i32 = arith.constant 0 : i32
    %c0_i32_0 = arith.constant 0 : i32
    %c0_i32_1 = arith.constant 0 : i32
    return %c0_i32, %c0_i32_0 : i32, i32
  }
  func.func @transform_9(%arg0: i32, %arg1: i32) -> (i32, i32) {
    %c0_i32 = arith.constant 0 : i32
    %c0_i32_0 = arith.constant 0 : i32
    %c0_i32_1 = arith.constant 0 : i32
    return %c0_i32, %c0_i32_0 : i32, i32
  }
  func.func @transform_10(%arg0: i32, %arg1: i32) -> (i32, i32, i32) {
    %c0_i32 = arith.constant 0 : i32
    %c0_i32_0 = arith.constant 0 : i32
    return %arg0, %arg1, %c0_i32 : i32, i32, i32
  }
}

</mosaic_0001>

<bundles_post_ra>
// kernel: tpu_custom_call.1
= control target key start
LH: loop header
LB: loop body
LE: loop exit
PB: predicated region body
PF: predicated region fallthrough
CT: control target
= control target key end

     0   :  { %s2890_s0 = inlined_call_operand.hbm [shape: f32[2,8,32], index: 0, kind: input, shape index: {}]   ;;  %s2891_s1 = inlined_call_operand.hbm [shape: f32[2,8,32], index: 1, kind: input, shape index: {}]   ;;  %s2892_s2 = inlined_call_operand.vmem [shape: f32[1,32], index: 2, kind: input, shape index: {}]   ;;  %s2893_s3 = inlined_call_operand.vmem [shape: f32[1,32], index: 3, kind: input, shape index: {}]   ;;  %s2894_s4 = inlined_call_operand.hbm [shape: bf16[32,32], index: 4, kind: input, shape index: {}]   ;;  %s2895_s5 = inlined_call_operand.vmem [shape: f32[1,32], index: 5, kind: input, shape index: {}]   ;;  %s2896_s6 = inlined_call_operand.hbm [shape: bf16[32,64], index: 6, kind: input, shape index: {}]   ;;  %s2897_s7 = inlined_call_operand.vmem [shape: f32[1,64], index: 7, kind: input, shape index: {}]   ;;  %s2898_s8 = inlined_call_operand.hbm [shape: bf16[32,32], index: 8, kind: input, shape index: {}]   ;;  %s2899_s9 = inlined_call_operand.vmem [shape: f32[1,32], index: 9, kind: input, shape index: {}]   ;;  %s2900_s10 = inlined_call_operand.hbm [shape: f32[2,8,32], index: 10, kind: output, shape index: {}]  }
   0x1   :  { %2907 = sst [smem:[#allocation20_spill]] %s2890_s0 }
   0x2   :  { %2908 = sst [smem:[#allocation21_spill]] %s2894_s4 }
   0x3   :  { %2909 = sst [smem:[#allocation22_spill]] %s2896_s6 }
   0x4   :  { %2910 = sst [smem:[#allocation23_spill]] %s2898_s8 }
   0x5   :  { %2911 = sst [smem:[#allocation24_spill]] %s2900_s10 }
   0x6   :  { %15 = vsyncpa [#allocation3], 0 }
   0x7   :  { %17 = vsyncpa [#allocation3 + $0x1], 0 }
   0x8   :  { %18 = vsyncpa [#allocation6], 0 }
   0x9   :  { %20 = vsyncpa [#allocation6 + $0x1], 0 }
   0xa   :  { %21 = vsyncpa [#allocation9], 0 }
   0xb   :  { %22 = vsyncpa [#allocation4], 0 }
   0xc   :  { %24 = vsyncpa [#allocation4 + $0x1], 0  ;;  %s2480_s13 = smov 0   ;;  %s2482_s14 = smov 0  }
   0xd   :  { %s2484_s15 = smov 0   ;;  %s2486_s16 = smov 0  }
   0xe   :  { %s2488_s17 = smov 0   ;;  %s2490_s18 = smov 0  }
   0xf LB: > { %2912 = sst [smem:[#allocation17_spill]] %s2384_s13  ;;  %s2511_s19 = sadd.s32 4294967295, %s2404_s18   ;;  %s2404_s18 = sphi %s2490_s18, %s30_s18   ;;  %s2400_s17 = sphi %s2488_s17, %s2941_s17   ;;  %s2396_s16 = sphi %s2486_s16, %s2940_s16   ;;  %s2392_s15 = sphi %s2484_s15, %s2939_s15   ;;  %s2388_s14 = sphi %s2482_s14, %s2938_s14   ;;  %s2384_s13 = sphi %s2480_s13, %s2937_s13  }
  0x10   : > { %s1893_s20 = sadd.s32 4294967294, %s2404_s18   ;;  %p64_p0 = scmp.ne.s32.totalorder %s2388_s14, %s2384_s13 }
  0x11   : > { %p2901_p1 = scmp.eq.s32.totalorder %s2511_s19, 0  ;;  %p290_p3 = scmp.eq.s32.totalorder %s1893_s20, 1 }
  0x12   : > { %p1894_p5 = scmp.ge.s32.totalorder %s2404_s18, 1  ;;  %p297_p7 = scmp.lt.s32.totalorder %s2404_s18, 3 }
  0x13   : > { %p2520_p4 = por %p2901_p1, %p64_p0  ;;  %p2525_p6 = por %p290_p3, %p64_p0 }
  0x14   : > { %p2530_p8 = pnand %p1894_p5, %p297_p7  ;;  %s2406_s24 = smov [#allocation7]  }
  0x15   : > { %s2913_s21 = scalar_select %p2520_p4, 1, 0 }
  0x16   : > { %s2914_s22 = scalar_select %p2525_p6, 1, 0 }
  0x17   : > { %s315_s25 = sshll.u32 %s2406_s24, 4  ;;  %p2059_p9 = pneg %p2530_p8  ;;  %s316_s25 = int_to_ptr.vmem [resolvable:$true] %s315_s25 }
  0x18   : > { %2915 = sst [smem:[#allocation18_spill]] %s2914_s22  ;;  %s2407_s27 = smov [#allocation8]  }
  0x19   : > { %p2539_p11 = pnand %p2059_p9, %p2901_p1  ;;  %s331_s28 = sshll.u32 %s2407_s27, 4  ;;  %s332_s28 = int_to_ptr.vmem [resolvable:$true] %s331_s28 }
  0x1a   : > { %s2408_s29 = smov [#allocation10]   ;;  %s2189_s11 = scalar_lea.vmem %s316_s25, 256 }
  0x1b   : > { %s347_s30 = sshll.u32 %s2408_s29, 4  ;;  %p2180_p12 = pneg %p2539_p11  ;;  %s348_s30 = int_to_ptr.vmem [resolvable:$true] %s347_s30 }
  0x1c   : > { %p2190_p13 = scmp.ne.s32.totalorder %s316_s25, %s2189_s11  ;;  %p2197_p5 = scmp.lt.s32.totalorder %s316_s25, %s316_s25 }
  0x1d   : > { %p2198_p7 = scmp.lt.s32.totalorder %s2189_s11, %s2189_s11 }
  0x1e   : > { %p2192_p0 = pnand %p2190_p13, %p2180_p12 }
  0x1f   : > { %p2199_p9 = por %p2198_p7, %p2197_p5 }
  0x20   : > { %p2193_p3 = pneg %p2192_p0 }
  0x22   : > { %p2200_p10 = pnand %p2199_p9, %p2193_p3 }
  0x24   : > { %2203 = shalt.err (!%p2200_p10)
}
  0x25   : > { %s2409_s12 = smov 64   ;;  %s2410_s20 = smov 4  }
  0x26   : > { %s2918_s4 = sld [smem:[#allocation21_spill]]  ;;  %s2215_s29 = scalar_lea.vmem %s332_s28, 256 }
  0x27   : > { %p2216_p1 = scmp.ne.s32.totalorder %s332_s28, %s2215_s29  ;;  %p2223_p2 = scmp.lt.s32.totalorder %s332_s28, %s332_s28 }
  0x28   : > { %p2224_p6 = scmp.lt.s32.totalorder %s2215_s29, %s2215_s29 }
  0x29   : > { %p2218_p13 = pnand %p2216_p1, %p2180_p12 }
  0x2a   : > { %p2225_p5 = por %p2224_p6, %p2223_p2 }
  0x2b   : > { %p2219_p0 = pneg %p2218_p13 }
  0x2c   : > { %2062 = dma.hbm_to_vmem [thread:$0]  (!%p2539_p11), %s2918_s4, 256, %s316_s25, [#allocation6], %s2409_s12, %s2409_s12, %s2410_s20  }
  0x2d   : > { %p2226_p3 = pnand %p2225_p5, %p2219_p0 }
  0x2f   : > { %2229 = shalt.err (!%p2226_p3)
}
  0x30   : > { %s2919_s6 = sld [smem:[#allocation22_spill]]  ;;  %s2241_s25 = scalar_lea.vmem %s348_s30, 256 }
  0x31   : > { %p2242_p10 = scmp.ne.s32.totalorder %s348_s30, %s2241_s25  ;;  %p2249_p9 = scmp.lt.s32.totalorder %s348_s30, %s348_s30 }
  0x32   : > { %p2250_p13 = scmp.lt.s32.totalorder %s2241_s25, %s2241_s25 }
  0x33   : > { %p2244_p7 = pnand %p2242_p10, %p2180_p12 }
  0x34   : > { %p2251_p4 = por %p2250_p13, %p2249_p9 }
  0x35   : > { %p2245_p1 = pneg %p2244_p7 }
  0x36   : > { %2065 = dma.hbm_to_vmem [thread:$0]  (!%p2539_p11), %s2919_s6, 256, %s332_s28, [#allocation9], %s2409_s12, %s2409_s12, %s2410_s20  }
  0x37   : > { %p2252_p2 = pnand %p2251_p4, %p2245_p1 }
  0x39   : > { %2255 = shalt.err (!%p2252_p2)
}
  0x3a   : > { %s2920_s8 = sld [smem:[#allocation23_spill]]  ;;  %s51_s22 = sadd.s32 1, %s2392_s15 }
  0x3b   : > { %s42_s28 = sadd.s32 1, %s2400_s17  ;;  %p58_p4 = scmp.ne.s32.totalorder %s2392_s15, %s2388_s14 }
  0x3c   : > { %p44_p6 = scmp.ge.s32.totalorder %s42_s28, 2  ;;  %p59_p12 = scmp.eq.s32.totalorder %s2404_s18, 0 }
  0x3d   : > { %p2921_p0 = scmp.eq.s32.totalorder %s2511_s19, 1  ;;  %p2083_p3 = scmp.lt.s32.totalorder %s2404_s18, 2 }
  0x3e   : > { %s2943_s28 = smov (%p44_p6, %s42_s28), 0  ;;  %p60_p10 = por %p59_p12, %p58_p4 }
  0x3f   : > { %p2576_p5 = por %p2921_p0, %p58_p4  ;;  %2923 = sst [smem:[#allocation19_spill]] %s2943_s28 }
  0x40   : > { %2068 = dma.hbm_to_vmem [thread:$0]  (!%p2539_p11), %s2920_s8, 256, %s348_s30, [#allocation9], %s2409_s12, %s2409_s12, %s2410_s20  }
  0x41   : > { %s364_s29 = sand.u32 1, %s2392_s15   ;;  %s46_s11 = ssub.s32 %s2400_s17, %s2943_s28 }
  0x42   : > { %p49_p11 = scmp.eq.s32.totalorder %s46_s11, 0  ;;  %s1899_s30 = sshll.u32 %s364_s29, 3 }
  0x43   : > { %s1900_s12 = sshll.u32 %s2400_s17, 7  ;;  %s2924_s0 = sld [smem:[#allocation20_spill]] }
  0x44   : > { %s2588_s20 = scalar_select %p49_p11, %s2392_s15, %s51_s22  }
  0x45   : > { %s368_s4 = scalar_lea.vmem [#allocation2], %s1899_s30  ;;  %p2595_p7 = pnand %p2083_p3, %p60_p10 }
  0x46   : > { %s376_s6 = sshll.u32 %s368_s4, 4  ;;  %s2602_s11 = scalar_lea.hbm %s2891_s1, %s1900_s12  ;;  %s377_s6 = int_to_ptr.vmem [resolvable:$true] %s376_s6 }
  0x47   : > { %s383_s22 = sand.u32 1, %s2404_s18   ;;  %s365_s28 = scalar_lea.sflag [#allocation3], %s364_s29 }
  0x48   : > { %p2258_p1 = pneg %p2595_p7  ;;  %s2269_s25 = scalar_lea.vmem %s377_s6, 128 }
  0x49   : > { %s374_s27 = scalar_lea.hbm %s2924_s0, %s1900_s12  ;;  %p2270_p9 = scmp.ne.s32.totalorder %s377_s6, %s2269_s25 }
  0x4a   : > { %s2411_s4 = smov [#allocation2]  }
  0x4b   : > { %p2272_p13 = pnand %p2270_p9, %p2258_p1  ;;  %s2274_s24 = sshll.u32 %s2411_s4, 4  ;;  %s2275_s24 = int_to_ptr.vmem [resolvable:$false] %s2274_s24 }
  0x4c   : > { %s2276_s0 = scalar_lea.vmem %s2275_s24, 256  ;;  %p2277_p4 = scmp.lt.s32.totalorder %s377_s6, %s2275_s24 }
  0x4d   : > { %p2273_p2 = pneg %p2272_p13  ;;  %p2278_p6 = scmp.lt.s32.totalorder %s2276_s0, %s2269_s25 }
  0x4f   : > { %p2279_p12 = por %p2278_p6, %p2277_p4 }
  0x51   : > { %p2280_p0 = pnand %p2279_p12, %p2273_p2 }
  0x53   : > { %2283 = shalt.err (!%p2280_p0)
}
  0x54   : > { %2072 = dma.hbm_to_vmem [thread:$0]  (!%p2595_p7), %s374_s27, 128, %s377_s6, %s365_s28  }
  0x55   : > { %s387_s10 = scalar_lea.vmem [#allocation5], %s1899_s30  ;;  %s384_s29 = scalar_lea.sflag [#allocation6], %s383_s22 }
  0x56   : > { %s394_s13 = sshll.u32 %s387_s10, 4  ;;  %s2412_s4 = smov [#allocation5]   ;;  %s395_s13 = int_to_ptr.vmem [resolvable:$true] %s394_s13 }
  0x57   : > { %s2297_s12 = scalar_lea.vmem %s395_s13, 128  ;;  %s2302_s24 = sshll.u32 %s2412_s4, 4  ;;  %s2303_s24 = int_to_ptr.vmem [resolvable:$false] %s2302_s24 }
  0x58   : > { %p2298_p3 = scmp.ne.s32.totalorder %s395_s13, %s2297_s12  ;;  %s2304_s0 = scalar_lea.vmem %s2303_s24, 256 }
  0x59   : > { %p2305_p9 = scmp.lt.s32.totalorder %s395_s13, %s2303_s24  ;;  %p2306_p13 = scmp.lt.s32.totalorder %s2304_s0, %s2297_s12 }
  0x5a   : > { %p2300_p10 = pnand %p2298_p3, %p2258_p1 }
  0x5b   : > { %p2307_p2 = por %p2306_p13, %p2305_p9 }
  0x5c   : > { %p2301_p11 = pneg %p2300_p10 }
  0x5e   : > { %p2308_p4 = pnand %p2307_p2, %p2301_p11 }
  0x60   : > { %2311 = shalt.err (!%p2308_p4)
}
  0x61   : > { %2075 = dma.hbm_to_vmem [thread:$0]  (!%p2595_p7), %s2602_s11, 128, %s395_s13, %s384_s29  }
  0x62   : > { %403 = sbr.rel (%p2530_p8) target bundleno = 1871 (0x74f), region = 60  ;;  %s2621_s6 = sand.u32 (!%p2530_p8), 1, %s2388_s14  }
  0x63   : > { %s2624_s28 = sshll.u32 (!%p2530_p8), %s2621_s6, 3  ;;  %s406_s30 = scalar_lea.sflag (!%p2530_p8), [#allocation3], %s2621_s6 }
  0x64   : > { %s409_s27 = scalar_lea.vmem (!%p2530_p8), [#allocation2], %s2624_s28  ;;  %p2926_p1 = scmp.ne.s32.totalorder (!%p2530_p8), %s2913_s21, 0 }
  0x67   : > { %2363 = dma.done.wait (%p2926_p1), %s406_s30, 128  }
  0x68   : > { %2365 = vsyncadd (%p2926_p1), %s406_s30, 4294967168  ;;  %s414_s8 = sand.u32 1, %s2511_s19   ;;  %s418_s11 = scalar_lea.vmem [#allocation5], %s2624_s28 }
  0x69   : > { %s415_s23 = scalar_lea.sflag [#allocation6], %s414_s8 }
  0x6a   : > { %2367 = dma.done.wait (%p2926_p1), %s415_s23, 128  }
  0x6b   : > { %2369 = vsyncadd (%p2926_p1), %s415_s23, 4294967168  ;;  %p2927_p8 = scmp.eq.s32.totalorder %s2511_s19, 0 }
  0x6d   : > { %2371 = dma.done.wait (%p2927_p8), [#allocation6], 256   ;;  %p2928_p7 = pmov %p2927_p8 }
  0x6f   : > { %2373 = vsyncadd (%p2928_p7), [#allocation6], 4294967040  ;;  %p2929_p6 = pmov %p2928_p7 }
  0x71   : > { %2375 = dma.done.wait (%p2929_p6), [#allocation9], 512   ;;  %p2930_p12 = pmov %p2929_p6 }
  0x72   : > { %vm477_vm0 = vcmask 261120   ;;  %v476_v0 = vld [vmem:[%s418_s11] sm:$0xff]  ;;  %v475_v1 = vld [vmem:[%s409_s27] sm:$0xff]  ;;  %v2413_v16 = vmov 0.0   ;;  %vm2414_vm1 = vmmov 0   ;;  %s2415_s4 = smov 112   ;;  %v670_v51 = vlaneseq }
  0x73   : > { %2377 = vsyncadd (%p2930_p12), [#allocation9], 4294966784  ;;  %v507_v2 = vsel %vm477_vm0, %v476_v0, 0.0  ;;  %v478_v3 = vsel %vm477_vm0, %v475_v1, 0.0  ;;  %v2152_v14 = vld [vmem:[#allocation8 + $0x8] sm:$0xff]   ;;  %v2153_v15 = vld [vmem:[#allocation7 + $0x8] sm:$0xff]   ;;  %1977 = vmatprep.subr.bf16.mxu1 %v2413_v16  ;;  %1969 = vmatprep.subr.bf16.mxu0 %v2413_v16 }
  0x74   : > { %508 = vadd.xlane.f32.xlu0 %v507_v2  ;;  %1978 = vmatpush3.bf16.msra.mxu1 %v2152_v14  ;;  %v2154_v17 = vld [vmem:[#allocation8] sm:$0xff]   ;;  %v2155_v18 = vld [vmem:[#allocation7] sm:$0xff]   ;;  %s2416_s24 = smov 120   ;;  %s2417_s0 = smov 104   ;;  %v2418_v49 = vmov 1983009808  }
  0x75   : > { %1970 = vmatpush3.bf16.msra.mxu0 %v2153_v15  ;;  %1979 = vmatprep.subr.bf16.mxu1 %v2413_v16  ;;  %v1910_v26 = vld [vmem:[%s2892_s2] ss:$0 sm:$0xff]  ;;  %v668_v50 = vunpack.c.l.s4 %v2418_v49  ;;  %v2419_v52 = vmov 1934713408   ;;  %v671_v55 = vshrl.u32 %v670_v51, 7  ;;  %vm1107_vm2 = vcmask 64512  }
  0x76   : > { %1981 = vmatprep.mubr.msk.bf16.mxu1 %vm2414_vm1, %v2413_v16  ;;  %1971 = vmatprep.subr.bf16.mxu0 %v2413_v16  ;;  %v1911_v28 = vld [vmem:[%s2893_s3] ss:$0 sm:$0xff]  ;;  %v700_v53 = vunpack.c.l.s4 %v2419_v52  ;;  %s2420_s30 = smov 96   ;;  %vm1343_vm3 = vcmask 1043456   ;;  %s2421_s27 = smov 16   ;;  %vm1674_vm4 = vcmask 130048  }
  0x77   : > { %1973 = vmatprep.mubr.msk.bf16.mxu0 %vm2414_vm1, %v2413_v16  ;;  %v1916_v37 = vld [vmem:[%s2897_s7] ss:$0 sm:$0xff]  ;;  %v669_v54 = vunpack.c.0.s8 %v668_v50  ;;  %s2422_s8 = smov 8   ;;  %s2423_s23 = smov 24   ;;  %vm1676_vm5 = vcmask 195584  }
  0x78   : > { %479 = vadd.xlane.f32.xlu0 %v478_v3  ;;  %1980 = vmatpush3.bf16.msra.mxu1 %v2154_v17  ;;  %v1912_v41 = vld [vmem:[%s2895_s5] ss:$0 sm:$0xff]  ;;  %v701_v57 = vunpack.c.0.s8 %v700_v53  ;;  %s1941_s21 = sshll.u32 %s2396_s16, 7  ;;  %s471_s22 = scalar_lea.vmem [#allocation11], %s2624_s28 }
  0x79   : > { %1991 = vmatprep.subr.bf16.mxu1 %v2413_v16  ;;  %1972 = vmatpush3.bf16.msra.mxu0 %v2155_v18  ;;  %v2685_v58 = vsub.s32 %v669_v54, %v671_v55  ;;  %s1761_s25 = sshll.u32 %s471_s22, 4  ;;  %s2931_s29 = sld [smem:[#allocation24_spill]]  ;;  %s2843_s25 = int_to_ptr.vmem [resolvable:$true] %s1761_s25 }
  0x7a   : > { %1985 = vmatprep.subr.bf16.mxu0 %v2413_v16  ;;  %s2312_s16 = scalar_lea.vmem %s2843_s25, 128  ;;  %s2424_s28 = smov [#allocation11]  }
  0x7b   : > { %p2313_p0 = scmp.ne.s32.totalorder %s2843_s25, %s2312_s16 }
  0x7d   : > { %p2314_p3 = pnand %p2313_p0, %p2576_p5 }
  0x7f   : > { %s2841_s12 = scalar_lea.hbm %s2931_s29, %s1941_s21  ;;  %p2315_p10 = pneg %p2314_p3 }
  0xfd   : > { %v509_v4 = vpop.xlane.xlu0 %508 }
  0xfe   : > { %v510_v5 = vmul.f32 0.03125, %v509_v4 }
 0x100   : > { %v511_v6 = vsub.f32 %v476_v0, %v510_v5 }
 0x101   : > { %v480_v7 = vpop.xlane.xlu0 %479 }
 0x102   : > { %v482_v8 = vmul.f32 0.03125, %v480_v7  ;;  %v512_v9 = vmul.f32 %v511_v6, %v511_v6 }
 0x104   : > { %v483_v10 = vsub.f32 %v475_v1, %v482_v8  ;;  %v513_v11 = vsel %vm477_vm0, %v512_v9, 0.0  ;;  %v2699_v1 = vsub.s32 %v701_v57, %v671_v55 }
 0x105   : > { %514 = vadd.xlane.f32.xlu1 %v513_v11 }
 0x106   : > { %v484_v12 = vmul.f32 %v483_v10, %v483_v10 }
 0x108   : > { %v485_v13 = vsel %vm477_vm0, %v484_v12, 0.0 }
 0x109   : > { %486 = vadd.xlane.f32.xlu1 %v485_v13 }
 0x18e   : > { %v515_v19 = vpop.xlane.xlu1 %514 }
 0x18f   : > { %v516_v20 = vmul.f32 0.03125, %v515_v19 }
 0x191   : > { %v517_v21 = vadd.f32 1e-05, %v516_v20 }
 0x192   : > { %v487_v22 = vpop.xlane.xlu1 %486 }
 0x193   : > { %2158 = vrsqrt.f32 %v517_v21  ;;  %v488_v23 = vmul.f32 0.03125, %v487_v22 }
 0x195   : > { %v489_v24 = vadd.f32 1e-05, %v488_v23 }
 0x197   : > { %2160 = vrsqrt.f32 %v489_v24 }
 0x1a0   : > { %v2159_v25 = vpop.eup %2158 }
 0x1a1   : > { %v519_v27 = vmul.f32 %v2159_v25, %v511_v6 }
 0x1a3   : > { %v520_v29 = vmul.f32 %v1910_v26, %v519_v27 }
 0x1a4   : > { %v2161_v30 = vpop.eup %2160 }
 0x1a5   : > { %v521_v31 = vadd.f32 %v1911_v28, %v520_v29  ;;  %v491_v32 = vmul.f32 %v2161_v30, %v483_v10 }
 0x1a7   : > { %v522_v33 = vpack.c.bf16 %v521_v31, %v521_v31  ;;  %v498_v34 = vmul.f32 %v1910_v26, %v491_v32 }
 0x1a9   : > { %1982 = vmatmul.mubr.msk.bf16.vlgmr.msra.gmra.mxu1 %vm477_vm0, %v522_v33  ;;  %v505_v35 = vadd.f32 %v1911_v28, %v498_v34 }
 0x1aa   : > { %1993 = vmatprep.mubr.msk.bf16.mxu1 %vm2414_vm1, %v2413_v16 }
 0x1ab   : > { %v506_v36 = vpack.c.bf16 %v505_v35, %v505_v35 }
 0x1ad   : > { %1974 = vmatmul.mubr.msk.bf16.vlgmr.msra.gmra.mxu0 %vm477_vm0, %v506_v36 }
 0x1ae   : > { %1987 = vmatprep.mubr.msk.bf16.mxu0 %vm2414_vm1, %v2413_v16 }
 0x269   : > { %v649_v38 = vpop.f32.mrf.mxu1 }
 0x26a   : > { %v2675_v39 = vadd.f32 %v1916_v37, %v649_v38 }
 0x26b   : > { %v1983_v40 = vpop.f32.mrf.mxu1 }
 0x26c   : > { %809 = vrot.lane.b32.xlu1 %v2675_v39, %s2415_s4  ;;  %806 = vrot.lane.b32.xlu0 %v2675_v39, %s2416_s24 }
 0x26d   : > { %v583_v42 = vpop.f32.mrf.mxu0  ;;  %v652_v43 = vpop.f32.mrf.mxu1 }
 0x26e   : > { %v584_v44 = vadd.f32 %v1912_v41, %v583_v42 }
 0x26f   : > { %v1975_v45 = vpop.f32.mrf.mxu0  ;;  %v1984_v46 = vpop.f32.mrf.mxu1 }
 0x270   : > { %812 = vrot.lane.b32.xlu1 %v2675_v39, %s2417_s0  ;;  %659 = vrot.lane.b32.xlu0 %v584_v44, %s2415_s4  ;;  %s1747_s4 = scalar_lea.sflag [#allocation4], %s2621_s6 }
 0x271   : > { %v586_v47 = vpop.f32.mrf.mxu0 }
 0x273   : > { %v1976_v48 = vpop.f32.mrf.mxu0 }
 0x274   : > { %656 = vrot.lane.b32.xlu1 %v584_v44, %s2416_s24  ;;  %s2316_s24 = sshll.u32 %s2424_s28, 4  ;;  %s2317_s24 = int_to_ptr.vmem [resolvable:$false] %s2316_s24 }
 0x275   : > { %p2319_p11 = scmp.lt.s32.totalorder %s2843_s25, %s2317_s24 }
 0x278   : > { %662 = vrot.lane.b32.xlu1 %v584_v44, %s2417_s0  ;;  %s2318_s0 = scalar_lea.vmem %s2317_s24, 256 }
 0x279   : > { %p2320_p9 = scmp.lt.s32.totalorder %s2318_s0, %s2312_s16 }
 0x27b   : > { %p2321_p13 = por %p2320_p9, %p2319_p11 }
 0x27d   : > { %p2322_p2 = pnand %p2321_p13, %p2315_p10 }
 0x2de   : > { %v2683_v56 = vpop.permute.xlu1 %809  ;;  %v2691_v61 = vpop.permute.xlu0 %806 }
 0x2df   : > { %v815_v59 = vcombine.low %v2675_v39, %v2683_v56  ;;  %v816_v60 = vcombine.high %v2675_v39, %v2683_v56 }
 0x2e1   : > { %v823_v2 = vrot.slane %v815_v59, %v2685_v58  ;;  %v830_v3 = vrot.slane %v816_v60, %v2685_v58 }
 0x2e2   : > { %v2693_v62 = vpop.permute.xlu1 %812  ;;  %v660_v11 = vpop.permute.xlu0 %659 }
 0x2e3   : > { %v831_v63 = vcombine.low %v2691_v61, %v2693_v62  ;;  %v832_v0 = vcombine.high %v2691_v61, %v2693_v62  ;;  %v665_v17 = vcombine.low %v584_v44, %v660_v11  ;;  %v666_v18 = vcombine.high %v584_v44, %v660_v11 }
 0x2e5   : > { %v839_v4 = vrot.slane %v831_v63, %v2685_v58  ;;  %v846_v5 = vrot.slane %v832_v0, %v2685_v58  ;;  %v673_v30 = vrot.slane %v665_v17, %v2685_v58  ;;  %v680_v31 = vrot.slane %v666_v18, %v2685_v58 }
 0x2e6   : > { %v657_v6 = vpop.permute.xlu1 %656 }
 0x2e7   : > { %v847_v7 = vcombine.low %v823_v2, %v839_v4  ;;  %v848_v8 = vcombine.high %v823_v2, %v839_v4  ;;  %v863_v9 = vcombine.low %v830_v3, %v846_v5  ;;  %v864_v10 = vcombine.high %v830_v3, %v846_v5 }
 0x2e9   : > { %v855_v12 = vrot.slane %v847_v7, %v2699_v1  ;;  %v862_v13 = vrot.slane %v848_v8, %v2699_v1  ;;  %v871_v14 = vrot.slane %v863_v9, %v2699_v1  ;;  %v878_v15 = vrot.slane %v864_v10, %v2699_v1 }
 0x2ea   : > { %v663_v19 = vpop.permute.xlu1 %662 }
 0x2eb   : > { %v883_v20 = vcombine.low %v855_v12, %v862_v13  ;;  %v1922_v21 = vcombine.high %v855_v12, %v862_v13  ;;  %v899_v22 = vcombine.low %v871_v14, %v878_v15  ;;  %v1923_v23 = vcombine.high %v871_v14, %v878_v15 }
 0x2ec   : > { %v681_v24 = vcombine.low %v657_v6, %v663_v19  ;;  %v682_v25 = vcombine.high %v657_v6, %v663_v19 }
 0x2ed   : > { %v890_v26 = vrot.slane %v883_v20, %v2685_v58  ;;  %v898_v27 = vrot.slane %v1922_v21, %v2685_v58  ;;  %v906_v28 = vrot.slane %v899_v22, %v2685_v58  ;;  %v914_v29 = vrot.slane %v1923_v23, %v2685_v58 }
 0x2ee   : > { %v689_v32 = vrot.slane %v681_v24, %v2685_v58  ;;  %v696_v33 = vrot.slane %v682_v25, %v2685_v58 }
 0x2ef   : > { %v915_v34 = vcombine.low %v890_v26, %v898_v27  ;;  %v931_v35 = vcombine.low %v906_v28, %v914_v29  ;;  %v916_v36 = vcombine.high %v890_v26, %v898_v27  ;;  %v932_v37 = vcombine.high %v906_v28, %v914_v29 }
 0x2f0   : > { %v697_v38 = vcombine.low %v673_v30, %v689_v32  ;;  %v698_v40 = vcombine.high %v673_v30, %v689_v32  ;;  %v713_v41 = vcombine.low %v680_v31, %v696_v33  ;;  %v714_v42 = vcombine.high %v680_v31, %v696_v33 }
 0x2f1   : > { %v923_v43 = vrot.slane %v915_v34, %v2699_v1  ;;  %v939_v44 = vrot.slane %v931_v35, %v2699_v1  ;;  %v930_v51 = vrot.slane %v916_v36, %v2699_v1  ;;  %v946_v52 = vrot.slane %v932_v37, %v2699_v1 }
 0x2f2   : > { %v705_v45 = vrot.slane %v697_v38, %v2699_v1  ;;  %v712_v46 = vrot.slane %v698_v40, %v2699_v1  ;;  %v721_v47 = vrot.slane %v713_v41, %v2699_v1  ;;  %v728_v48 = vrot.slane %v714_v42, %v2699_v1 }
 0x2f3   : > { %v947_v49 = vcombine.low %v923_v43, %v939_v44  ;;  %v948_v50 = vcombine.high %v923_v43, %v939_v44  ;;  %v949_v8 = vcombine.low %v930_v51, %v946_v52  ;;  %v950_v9 = vcombine.high %v930_v51, %v946_v52 }
 0x2f4   : > { %v733_v53 = vcombine.low %v705_v45, %v712_v46  ;;  %v1920_v54 = vcombine.high %v705_v45, %v712_v46  ;;  %v749_v55 = vcombine.low %v721_v47, %v728_v48  ;;  %v1921_v57 = vcombine.high %v721_v47, %v728_v48 }
 0x2f5   : > { %v951_v59 = vpack.c.bf16 %v947_v49, %v947_v49  ;;  %v952_v60 = vpack.c.bf16 %v948_v50, %v948_v50  ;;  %v953_v17 = vpack.c.bf16 %v949_v8, %v949_v8  ;;  %v954_v18 = vpack.c.bf16 %v950_v9, %v950_v9 }
 0x2f6   : > { %v740_v63 = vrot.slane %v733_v53, %v2685_v58  ;;  %v748_v0 = vrot.slane %v1920_v54, %v2685_v58  ;;  %v756_v2 = vrot.slane %v749_v55, %v2685_v58  ;;  %v764_v3 = vrot.slane %v1921_v57, %v2685_v58 }
 0x2f7   : > { %v1112_v4 = vsel %vm1107_vm2, %v951_v59, 0  ;;  %v1158_v5 = vsel %vm1107_vm2, %v952_v60, 0  ;;  %v1204_v23 = vsel %vm1107_vm2, %v953_v17, 0  ;;  %v1250_v24 = vsel %vm1107_vm2, %v954_v18, 0 }
 0x2f8   : > { %v765_v6 = vcombine.low %v740_v63, %v748_v0  ;;  %v781_v7 = vcombine.low %v756_v2, %v764_v3  ;;  %1986 = vmatpush3.bf16.xpose.msra.mxu0 %v1112_v4  ;;  %1992 = vmatpush3.bf16.xpose.msra.mxu1 %v1158_v5  ;;  %v766_v10 = vcombine.high %v740_v63, %v748_v0 }
 0x2f9   : > { %1997 = vmatprep.subr.bf16.mxu0 %v2413_v16  ;;  %v782_v11 = vcombine.high %v756_v2, %v764_v3  ;;  %2003 = vmatprep.subr.bf16.mxu1 %v2413_v16 }
 0x2fa   : > { %v773_v12 = vrot.slane %v765_v6, %v2699_v1  ;;  %v789_v13 = vrot.slane %v781_v7, %v2699_v1  ;;  %v780_v21 = vrot.slane %v766_v10, %v2699_v1 }
 0x2fb   : > { %v796_v22 = vrot.slane %v782_v11, %v2699_v1 }
 0x2fc   : > { %v797_v14 = vcombine.low %v773_v12, %v789_v13  ;;  %v798_v15 = vcombine.high %v773_v12, %v789_v13 }
 0x2fd   : > { %v799_v25 = vcombine.low %v780_v21, %v796_v22  ;;  %v800_v26 = vcombine.high %v780_v21, %v796_v22 }
 0x2fe   : > { %v801_v19 = vpack.c.bf16 %v797_v14, %v797_v14  ;;  %v802_v20 = vpack.c.bf16 %v798_v15, %v798_v15 }
 0x2ff   : > { %v803_v27 = vpack.c.bf16 %v799_v25, %v799_v25  ;;  %v804_v28 = vpack.c.bf16 %v800_v26, %v800_v26 }
 0x300   : > { %1988 = vmatmul.mubr.msk.bf16.vlgmr.msra.gmra.mxu0 %vm1107_vm2, %v801_v19  ;;  %1994 = vmatmul.mubr.msk.bf16.vlgmr.msra.gmra.mxu1 %vm1107_vm2, %v802_v20 }
 0x301   : > { %1998 = vmatpush3.bf16.xpose.msra.mxu0 %v1204_v23  ;;  %2004 = vmatpush3.bf16.xpose.msra.mxu1 %v1250_v24 }
 0x302   : > { %1999 = vmatprep.mubr.msk.bf16.mxu0 %vm2414_vm1, %v2413_v16  ;;  %2005 = vmatprep.mubr.msk.bf16.mxu1 %vm2414_vm1, %v2413_v16 }
 0x303   : > { %2009 = vmatprep.subr.bf16.mxu0 %v2413_v16  ;;  %2015 = vmatprep.subr.bf16.mxu1 %v2413_v16 }
 0x308   : > { %2000 = vmatmul.mubr.msk.bf16.vlgmr.msra.gmra.mxu0 %vm1107_vm2, %v803_v27  ;;  %2006 = vmatmul.mubr.msk.bf16.vlgmr.msra.gmra.mxu1 %vm1107_vm2, %v804_v28 }
 0x309   : > { %2011 = vmatprep.mubr.msk.bf16.mxu0 %vm2414_vm1, %v2413_v16  ;;  %2017 = vmatprep.mubr.msk.bf16.mxu1 %vm2414_vm1, %v2413_v16 }
 0x3c0   : > { %v1148_v29 = vpop.f32.mrf.mxu0  ;;  %v1194_v30 = vpop.f32.mrf.mxu1 }
 0x3c1   : > { %v1295_v31 = vsel %vm1107_vm2, %v1194_v30, -inf  ;;  %v1292_v32 = vsel %vm1107_vm2, %v1148_v29, -inf }
 0x3c2   : > { %1296 = vmax.xlane.f32.xlu1 %v1295_v31  ;;  %v1995_v33 = vpop.f32.mrf.mxu1  ;;  %1293 = vmax.xlane.f32.xlu0 %v1292_v32  ;;  %v1989_v34 = vpop.f32.mrf.mxu0 }
 0x3c4   : > { %v1151_v35 = vpop.f32.mrf.mxu0  ;;  %v1197_v36 = vpop.f32.mrf.mxu1 }
 0x3c6   : > { %v1990_v37 = vpop.f32.mrf.mxu0  ;;  %v1996_v38 = vpop.f32.mrf.mxu1 }
 0x3c8   : > { %v1240_v40 = vpop.f32.mrf.mxu0  ;;  %v1286_v41 = vpop.f32.mrf.mxu1 }
 0x3c9   : > { %v1298_v42 = vsel %vm1107_vm2, %v1240_v40, -inf  ;;  %v1301_v47 = vsel %vm1107_vm2, %v1286_v41, -inf }
 0x3ca   : > { %v2007_v43 = vpop.f32.mrf.mxu1  ;;  %1299 = vmax.xlane.f32.xlu0 %v1298_v42  ;;  %v2001_v44 = vpop.f32.mrf.mxu0 }
 0x3cc   : > { %v1243_v45 = vpop.f32.mrf.mxu0  ;;  %v1289_v46 = vpop.f32.mrf.mxu1 }
 0x3ce   : > { %v2008_v48 = vpop.f32.mrf.mxu1  ;;  %1302 = vmax.xlane.f32.xlu0 %v1301_v47  ;;  %v2002_v49 = vpop.f32.mrf.mxu0 }
 0x3d3   : > { %957 = vrot.lane.b32.xlu1 %v2691_v61, %s2420_s30 }
 0x3d7   : > { %959 = vrot.lane.b32.xlu1 %v2683_v56, %s2420_s30 }
 0x44b   : > { %v1297_v50 = vpop.xlane.xlu1 %1296  ;;  %v1294_v51 = vpop.xlane.xlu0 %1293 }
 0x44c   : > { %v1305_v52 = vsub.f32 %v1194_v30, %v1297_v50  ;;  %v1304_v53 = vsub.f32 %v1148_v29, %v1294_v51 }
 0x44e   : > { %v1310_v54 = vmul.f32 1.442695, %v1305_v52  ;;  %v1308_v55 = vmul.f32 1.442695, %v1304_v53 }
 0x450   : > { %2162 = vpow2.f32 %v1310_v54 }
 0x451   : > { %2164 = vpow2.f32 %v1308_v55 }
 0x453   : > { %v1300_v56 = vpop.xlane.xlu0 %1299 }
 0x454   : > { %v1306_v2 = vsub.f32 %v1240_v40, %v1300_v56 }
 0x456   : > { %v1312_v4 = vmul.f32 1.442695, %v1306_v2 }
 0x457   : > { %v1303_v63 = vpop.xlane.xlu0 %1302 }
 0x458   : > { %v1307_v0 = vsub.f32 %v1286_v41, %v1303_v63 }
 0x45a   : > { %v1314_v3 = vmul.f32 1.442695, %v1307_v0 }
 0x45c   : > { %2166 = vpow2.f32 %v1314_v3 }
 0x45d   : > { %v2759_v57 = vpop.eup %2162  ;;  %2168 = vpow2.f32 %v1312_v4 }
 0x45e   : > { %v2761_v59 = vpop.eup %2164  ;;  %v1319_v60 = vsel %vm1107_vm2, %v2759_v57, 0.0 }
 0x45f   : > { %1320 = vadd.xlane.f32.xlu1 %v1319_v60  ;;  %v1316_v61 = vsel %vm1107_vm2, %v2761_v59, 0.0 }
 0x460   : > { %1317 = vadd.xlane.f32.xlu0 %v1316_v61 }
 0x469   : > { %v2769_v5 = vpop.eup %2166 }
 0x46a   : > { %v2771_v6 = vpop.eup %2168  ;;  %v1325_v7 = vsel %vm1107_vm2, %v2769_v5, 0.0 }
 0x470   : > { %961 = vrot.lane.b32.xlu1 %v2693_v62, %s2420_s30  ;;  %v1322_v62 = vsel %vm1107_vm2, %v2771_v6, 0.0 }
 0x476   : > { %955 = vrot.lane.b32.xlu0 %v2675_v39, %s2420_s30  ;;  %v958_v39 = vpop.permute.xlu1 %957 }
 0x47a   : > { %v960_v8 = vpop.permute.xlu1 %959 }
 0x494   : > { %1326 = vadd.xlane.f32.xlu1 %v1325_v7 }
 0x495   : > { %1323 = vadd.xlane.f32.xlu0 %v1322_v62 }
 0x4e8   : > { %v1321_v9 = vpop.xlane.xlu1 %1320 }
 0x4e9   : > { %v1318_v10 = vpop.xlane.xlu0 %1317  ;;  %2170 = vrcp.f32 %v1321_v9 }
 0x4ea   : > { %2172 = vrcp.f32 %v1318_v10 }
 0x4ec   : > { %v962_v11 = vpop.permute.xlu1 %961 }
 0x4ed   : > { %v983_v12 = vcombine.low %v958_v39, %v962_v11  ;;  %v984_v13 = vcombine.high %v958_v39, %v962_v11  ;;  %v956_v14 = vpop.permute.xlu0 %955 }
 0x4ee   : > { %v967_v15 = vcombine.low %v956_v14, %v960_v8  ;;  %v968_v17 = vcombine.high %v956_v14, %v960_v8 }
 0x4ef   : > { %v991_v18 = vrot.slane %v983_v12, %v2685_v58  ;;  %v998_v19 = vrot.slane %v984_v13, %v2685_v58 }
 0x4f0   : > { %v975_v20 = vrot.slane %v967_v15, %v2685_v58  ;;  %v982_v21 = vrot.slane %v968_v17, %v2685_v58 }
 0x4f2   : > { %v999_v22 = vcombine.low %v975_v20, %v991_v18  ;;  %v1000_v23 = vcombine.high %v975_v20, %v991_v18  ;;  %v1015_v24 = vcombine.low %v982_v21, %v998_v19  ;;  %v1016_v25 = vcombine.high %v982_v21, %v998_v19 }
 0x4f4   : > { %v1007_v26 = vrot.slane %v999_v22, %v2699_v1  ;;  %v1014_v27 = vrot.slane %v1000_v23, %v2699_v1  ;;  %v1023_v28 = vrot.slane %v1015_v24, %v2699_v1  ;;  %v1030_v29 = vrot.slane %v1016_v25, %v2699_v1 }
 0x4f6   : > { %v1035_v30 = vcombine.low %v1007_v26, %v1014_v27  ;;  %v1924_v31 = vcombine.high %v1007_v26, %v1014_v27  ;;  %v1051_v32 = vcombine.low %v1023_v28, %v1030_v29  ;;  %v1925_v33 = vcombine.high %v1023_v28, %v1030_v29  ;;  %v2171_v43 = vpop.eup %2170 }
 0x4f7   : > { %v2173_v48 = vpop.eup %2172  ;;  %v1333_v60 = vmul.f32 %v2171_v43, %v2759_v57 }
 0x4f8   : > { %v1042_v34 = vrot.slane %v1035_v30, %v2685_v58  ;;  %v1050_v35 = vrot.slane %v1924_v31, %v2685_v58  ;;  %v1058_v36 = vrot.slane %v1051_v32, %v2685_v58  ;;  %v1066_v37 = vrot.slane %v1925_v33, %v2685_v58 }
 0x4f9   : > { %v1332_v55 = vmul.f32 %v2173_v48, %v2761_v59  ;;  %v1337_v3 = vpack.c.bf16 %v1333_v60, %v1333_v60 }
 0x4fa   : > { %v1067_v38 = vcombine.low %v1042_v34, %v1050_v35  ;;  %v1083_v40 = vcombine.low %v1058_v36, %v1066_v37  ;;  %v1068_v41 = vcombine.high %v1042_v34, %v1050_v35  ;;  %v1084_v42 = vcombine.high %v1058_v36, %v1066_v37 }
 0x4fb   : > { %v1336_v2 = vpack.c.bf16 %v1332_v55, %v1332_v55 }
 0x4fc   : > { %v1075_v44 = vrot.slane %v1067_v38, %v2699_v1  ;;  %v1091_v45 = vrot.slane %v1083_v40, %v2699_v1  ;;  %v1082_v46 = vrot.slane %v1068_v41, %v2699_v1  ;;  %v1098_v47 = vrot.slane %v1084_v42, %v2699_v1  ;;  %v2156_v38 = vld [vmem:[#allocation10 + $0x8] sm:$0xff]  }
 0x4fe   : > { %v1099_v49 = vcombine.low %v1075_v44, %v1091_v45  ;;  %v1100_v50 = vcombine.high %v1075_v44, %v1091_v45  ;;  %v1101_v51 = vcombine.low %v1082_v46, %v1098_v47  ;;  %v1102_v52 = vcombine.high %v1082_v46, %v1098_v47 }
 0x500   : > { %v1103_v53 = vpack.c.bf16 %v1099_v49, %v1099_v49  ;;  %v1104_v54 = vpack.c.bf16 %v1100_v50, %v1100_v50  ;;  %v1105_v63 = vpack.c.bf16 %v1101_v51, %v1101_v51  ;;  %v1106_v0 = vpack.c.bf16 %v1102_v52, %v1102_v52  ;;  %v2157_v49 = vld [vmem:[#allocation10] sm:$0xff]  }
 0x502   : > { %v1345_v61 = vsel %vm1343_vm3, %v1103_v53, 0  ;;  %v1391_v56 = vsel %vm1343_vm3, %v1104_v54, 0  ;;  %v1437_v57 = vsel %vm1343_vm3, %v1105_v63, 0  ;;  %v1483_v59 = vsel %vm1343_vm3, %v1106_v0, 0 }
 0x503   : > { %2010 = vmatpush3.bf16.msra.mxu0 %v1345_v61  ;;  %2016 = vmatpush3.bf16.msra.mxu1 %v1391_v56 }
 0x504   : > { %2021 = vmatprep.subr.bf16.mxu0 %v2413_v16  ;;  %2027 = vmatprep.subr.bf16.mxu1 %v2413_v16 }
 0x506   : > { %2012 = vmatmul.mubr.msk.bf16.vlgmr.msra.gmra.mxu0 %vm1107_vm2, %v1336_v2  ;;  %2018 = vmatmul.mubr.msk.bf16.vlgmr.msra.gmra.mxu1 %vm1107_vm2, %v1337_v3 }
 0x507   : > { %2022 = vmatpush3.bf16.msra.mxu0 %v1437_v57  ;;  %2028 = vmatpush3.bf16.msra.mxu1 %v1483_v59 }
 0x508   : > { %2023 = vmatprep.mubr.msk.bf16.mxu0 %vm2414_vm1, %v2413_v16  ;;  %2029 = vmatprep.mubr.msk.bf16.mxu1 %vm2414_vm1, %v2413_v16 }
 0x509   : > { %2033 = vmatprep.subr.bf16.mxu0 %v2413_v16 }
 0x51d   : > { %v1327_v4 = vpop.xlane.xlu1 %1326 }
 0x51e   : > { %2174 = vrcp.f32 %v1327_v4  ;;  %v1324_v7 = vpop.xlane.xlu0 %1323 }
 0x51f   : > { %2176 = vrcp.f32 %v1324_v7 }
 0x52b   : > { %v2175_v62 = vpop.eup %2174 }
 0x52c   : > { %v2177_v39 = vpop.eup %2176  ;;  %v1335_v8 = vmul.f32 %v2175_v62, %v2769_v5 }
 0x52d   : > { %v1334_v9 = vmul.f32 %v2177_v39, %v2771_v6 }
 0x52e   : > { %v1339_v10 = vpack.c.bf16 %v1335_v8, %v1335_v8 }
 0x52f   : > { %v1338_v11 = vpack.c.bf16 %v1334_v9, %v1334_v9  ;;  %v1936_v9 = vld [vmem:[%s2899_s9] ss:$0 sm:$0xff] }
 0x530   : > { %2030 = vmatmul.mubr.msk.bf16.vlgmr.msra.gmra.mxu1 %vm1107_vm2, %v1339_v10 }
 0x531   : > { %2024 = vmatmul.mubr.msk.bf16.vlgmr.msra.gmra.mxu0 %vm1107_vm2, %v1338_v11 }
 0x532   : > { %2037 = vmatprep.mubr.msk.bf16.mxu0 %vm2414_vm1, %v2413_v16  ;;  %2034 = vmatpush3.bf16.msra.mxu0 %v2156_v38 }
 0x533   : > { %2035 = vmatprep.subr.bf16.mxu0 %v2413_v16 }
 0x536   : > { %2036 = vmatpush3.bf16.msra.mxu0 %v2157_v49 }
 0x5c6   : > { %v1381_v12 = vpop.f32.mrf.mxu0  ;;  %v1427_v13 = vpop.f32.mrf.mxu1 }
 0x5c8   : > { %v2013_v14 = vpop.f32.mrf.mxu0  ;;  %v2019_v15 = vpop.f32.mrf.mxu1 }
 0x5ca   : > { %v1384_v17 = vpop.f32.mrf.mxu0  ;;  %v1430_v18 = vpop.f32.mrf.mxu1 }
 0x5cc   : > { %v2014_v19 = vpop.f32.mrf.mxu0  ;;  %v2020_v20 = vpop.f32.mrf.mxu1 }
 0x5f0   : > { %v1519_v5 = vpop.f32.mrf.mxu1 }
 0x5f1   : > { %v1473_v21 = vpop.f32.mrf.mxu0  ;;  %v1541_v6 = vcombine.low %v1427_v13, %v1519_v5  ;;  %v1542_v22 = vcombine.high %v1427_v13, %v1519_v5 }
 0x5f2   : > { %v1525_v23 = vcombine.low %v1381_v12, %v1473_v21  ;;  %v1526_v24 = vcombine.high %v1381_v12, %v1473_v21  ;;  %v2031_v25 = vpop.f32.mrf.mxu1 }
 0x5f3   : > { %v1549_v26 = vrot.slane %v1541_v6, %v2685_v58  ;;  %v1556_v27 = vrot.slane %v1542_v22, %v2685_v58  ;;  %v2025_v28 = vpop.f32.mrf.mxu0 }
 0x5f4   : > { %v1533_v29 = vrot.slane %v1525_v23, %v2685_v58  ;;  %v1540_v30 = vrot.slane %v1526_v24, %v2685_v58  ;;  %v1522_v31 = vpop.f32.mrf.mxu1 }
 0x5f5   : > { %v1476_v32 = vpop.f32.mrf.mxu0 }
 0x5f6   : > { %v1557_v33 = vcombine.low %v1533_v29, %v1549_v26  ;;  %v1558_v34 = vcombine.high %v1533_v29, %v1549_v26  ;;  %v1573_v35 = vcombine.low %v1540_v30, %v1556_v27  ;;  %v1574_v36 = vcombine.high %v1540_v30, %v1556_v27  ;;  %v2032_v37 = vpop.f32.mrf.mxu1 }
 0x5f7   : > { %v2026_v40 = vpop.f32.mrf.mxu0 }
 0x5f8   : > { %v1565_v41 = vrot.slane %v1557_v33, %v2699_v1  ;;  %v1572_v42 = vrot.slane %v1558_v34, %v2699_v1  ;;  %v1581_v43 = vrot.slane %v1573_v35, %v2699_v1  ;;  %v1588_v44 = vrot.slane %v1574_v36, %v2699_v1 }
 0x5fa   : > { %v1593_v45 = vcombine.low %v1565_v41, %v1572_v42  ;;  %v1934_v46 = vcombine.high %v1565_v41, %v1572_v42  ;;  %v1609_v47 = vcombine.low %v1581_v43, %v1588_v44  ;;  %v1935_v48 = vcombine.high %v1581_v43, %v1588_v44 }
 0x5fc   : > { %v1600_v50 = vrot.slane %v1593_v45, %v2685_v58  ;;  %v1608_v51 = vrot.slane %v1934_v46, %v2685_v58  ;;  %v1616_v52 = vrot.slane %v1609_v47, %v2685_v58  ;;  %v1624_v53 = vrot.slane %v1935_v48, %v2685_v58 }
 0x5fe   : > { %v1626_v54 = vcombine.high %v1600_v50, %v1608_v51  ;;  %v1642_v55 = vcombine.high %v1616_v52, %v1624_v53  ;;  %v1625_v60 = vcombine.low %v1600_v50, %v1608_v51  ;;  %v1641_v61 = vcombine.low %v1616_v52, %v1624_v53 }
 0x600   : > { %v1640_v16 = vrot.slane %v1626_v54, %v2699_v1  ;;  %v1656_v56 = vrot.slane %v1642_v55, %v2699_v1  ;;  %v1633_v63 = vrot.slane %v1625_v60, %v2699_v1  ;;  %v1649_v0 = vrot.slane %v1641_v61, %v2699_v1 }
 0x602   : > { %v1659_v2 = vcombine.low %v1640_v16, %v1656_v56  ;;  %v1658_v3 = vcombine.high %v1633_v63, %v1649_v0  ;;  %v1657_v57 = vcombine.low %v1633_v63, %v1649_v0  ;;  %v1660_v58 = vcombine.high %v1640_v16, %v1656_v56 }
 0x604   : > { %1666 = vrot.lane.b32.xlu1 %v1659_v2, %s2421_s27  ;;  %1662 = vrot.lane.b32.xlu0 %v1658_v3, %s2422_s8 }
 0x608   : > { %1670 = vrot.lane.b32.xlu0 %v1660_v58, %s2423_s23 }
 0x676   : > { %v1663_v59 = vpop.permute.xlu0 %1662  ;;  %v1667_v4 = vpop.permute.xlu1 %1666 }
 0x677   : > { %v1673_v7 = vsel %vm1107_vm2, %v1657_v57, %v1663_v59 }
 0x678   : > { %v1675_v1 = vsel %vm1674_vm4, %v1673_v7, %v1667_v4 }
 0x67a   : > { %v1671_v62 = vpop.permute.xlu0 %1670 }
 0x67b   : > { %v1677_v39 = vsel %vm1676_vm5, %v1675_v1, %v1671_v62 }
 0x67c   : > { %v1678_v8 = vpack.c.bf16 %v1677_v39, %v1677_v39 }
 0x67e   : > { %2038 = vmatmul.mubr.msk.bf16.vlgmr.msra.gmra.mxu0 %vm477_vm0, %v1678_v8 }
 0x73e   : > { %v1739_v10 = vpop.f32.mrf.mxu0 }
 0x73f   : > { %v1740_v11 = vadd.f32 %v1936_v9, %v1739_v10 }
 0x740   : > { %v2039_v12 = vpop.f32.mrf.mxu0 }
 0x741   : > { %1745 = vst.msk [vmem:[%s471_s22] sm:$0xff] %vm477_vm0, %v1740_v11 }
 0x742   : > { %v1742_v13 = vpop.f32.mrf.mxu0 }
 0x743   : > { %2325 = shalt.err (!%p2322_p2)
}
 0x744   : > { %s2326_s30 = scalar_lea.hbm %s2841_s12, 128  ;;  %s2330_s8 = scalar_lea.hbm %s2931_s29, 256 }
 0x745   : > { %p2327_p4 = scmp.ne.s32.totalorder %s2841_s12, %s2326_s30  ;;  %p2331_p7 = scmp.lt.s32.totalorder %s2841_s12, %s2931_s29 }
 0x746   : > { %p2332_p6 = scmp.lt.s32.totalorder %s2330_s8, %s2326_s30 }
 0x747   : > { %p2328_p1 = pnand %p2327_p4, %p2576_p5 }
 0x748   : > { %p2333_p12 = por %p2332_p6, %p2331_p7 }
 0x749   : > { %p2329_p8 = pneg %p2328_p1 }
 0x74b   : > { %p2334_p0 = pnand %p2333_p12, %p2329_p8 }
 0x74d   : > { %2337 = shalt.err (!%p2334_p0)
}
 0x74e   : > { %2057 = dma.vmem_to_hbm [thread:$0]  (%p2576_p5), %s2843_s25, 128, %s2841_s12, %s1747_s4   ;;  %v2040_v14 = vpop.f32.mrf.mxu0 }
 0x74f PF: > { %s2932_s19 = sld [smem:[#allocation17_spill]]  ;;  %p2935_p10 = scmp.ge.s32.totalorder %s2404_s18, 2 }
 0x750   : > { %s2933_s21 = sld [smem:[#allocation18_spill]] }
 0x755   : > { %s1773_s22 = sand.u32 1, %s2932_s19  }
 0x756   : > { %p2934_p3 = scmp.ne.s32.totalorder %s2933_s21, 0  ;;  %s1774_s10 = scalar_lea.sflag [#allocation4], %s1773_s22 }
 0x758   : > { %p2077_p11 = pnand %p2935_p10, %p2934_p3 }
 0x75a   : > { %p2078_p9 = pneg %p2077_p11 }
 0x75c   : > { %2379 = dma.done.wait (%p2078_p9), %s1774_s10, 128  }
 0x75d   : > { %2381 = vsyncadd (%p2078_p9), %s1774_s10, 4294967168  ;;  %s30_s18 = sadd.s32 1, %s2404_s18   ;;  %s2936_s26 = sld [smem:[#allocation19_spill]] }
 0x75e   : > { %p27_p13 = scmp.ge.s32.totalorder %s30_s18, 4   ;;  %s2937_s13 = smov %s2388_s14 }
 0x75f   : > { %s2938_s14 = smov %s2392_s15  ;;  %s2939_s15 = smov %s2588_s20 }
 0x760   : > { %s2940_s16 = smov %s2400_s17  ;;  %29 = sbr.rel (!%p27_p13) target bundleno = 15 (0xf), region = 130 }
 0x763   : > { %s2941_s17 = smov %s2936_s26 }
 0x765   :  { %1779 = vsyncpa [#allocation3], 1 }
 0x766   :  { %1781 = vsyncpa [#allocation3 + $0x1], 1 }
 0x767   :  { %1782 = vsyncpa [#allocation6], 1 }
 0x768   :  { %1784 = vsyncpa [#allocation6 + $0x1], 1 }
 0x769   :  { %1785 = vsyncpa [#allocation9], 1 }
 0x76a   :  { %1786 = vsyncpa [#allocation4], 1 }
 0x76b   :  { %1788 = vsyncpa [#allocation4 + $0x1], 1 }

</bundles_post_ra>
